<compile_context>
chip_gen: v6e
topology: v6e:2x2x1
jax: 0.10.0
libtpu: 0.0.40
codegen_flags: <defaults>
</compile_context>

<pallas_src>
import functools

import jax
import jax.numpy as jnp
from jax.experimental import pallas as pl
from jax.experimental.pallas import tpu as pltpu


def _cdiv(a, b):
    return -(-a // b)


def _round_up(x, m):
    return ((x + m - 1) // m) * m


def _ce_kernel(logits_ref, gt_ref, sum_ref, cnt_ref, sum_sc, cnt_sc, *,
               rows_total, rows_per_tile, tiles_per_chunk):
    ch = pl.program_id(1)
    t = pl.program_id(2)

    @pl.when(t == 0)
    def _():
        sum_sc[...] = jnp.zeros_like(sum_sc)
        cnt_sc[...] = jnp.zeros_like(cnt_sc)

    logits = logits_ref[0].astype(jnp.float32)      # (C, R, 128): dense vregs
    gt = gt_ref[0].astype(jnp.int32)                # (R, 128)

    # Tail / duplicated-tile mask using the *logical* (unclamped) tile index.
    tile_idx = ch * tiles_per_chunk + t
    local_row = jax.lax.broadcasted_iota(jnp.int32, gt.shape, 0)      # (R, 128)
    in_bounds = (tile_idx * rows_per_tile + local_row) < rows_total

    valid = jnp.logical_and(gt > 0, in_bounds)      # (R, 128) bool
    tgt = gt - 1                                    # -1 never matches the iota

    # Numerically stable log-sum-exp over classes.  Axis 0 is the leading
    # (slab) axis, so these reductions are C-1 elementwise VALU ops.
    m = jnp.max(logits, axis=0)                                       # (R, 128)
    lse = m + jnp.log(jnp.sum(jnp.exp(logits - m[None]), axis=0))     # (R, 128)

    # Pick the target-class logit via one-hot select (no dynamic gather).
    cls = jax.lax.broadcasted_iota(jnp.int32, logits.shape, 0)        # (C, R, 128)
    picked = jnp.sum(jnp.where(cls == tgt[None], logits, 0.0), axis=0)

    # Per-(row, lane) partial accumulation: pure elementwise adds per step.
    sum_sc[...] = sum_sc[...] + jnp.where(valid, lse - picked, 0.0)
    cnt_sc[...] = cnt_sc[...] + valid.astype(jnp.float32)
    # TODO(synk): >2^24 positive pixels per (image, chunk) would need an int32
    # count accumulator to avoid f32 precision loss.

    @pl.when(t == pl.num_programs(2) - 1)
    def _():
        sum_ref[...] = jnp.zeros_like(sum_ref) + jnp.sum(sum_sc[...])
        cnt_ref[...] = jnp.zeros_like(cnt_ref) + jnp.sum(cnt_sc[...])


def _pick_rows_per_tile(rows, c, logits_itemsize, gt_itemsize, *,
                        target_tile_bytes=4 << 20, vmem_budget_bytes=18 << 20):
    """Rows-of-128-lanes per grid step: big enough to amortize per-step overhead
    (~4 MiB of logits per step), small enough to fit the double-buffered
    footprint in scoped VMEM on every TPU generation (incl. v7x's 64 MiB)."""
    per_row_logits = c * 128 * logits_itemsize
    per_row_foot = (2 * per_row_logits            # double-buffered logits
                    + 2 * 128 * gt_itemsize       # double-buffered gt
                    + 2 * 128 * 4)                # two f32 accumulators
    r = max(32, target_tile_bytes // per_row_logits // 32 * 32)
    r = min(r, max(32, vmem_budget_bytes // per_row_foot // 32 * 32))
    if r >= rows:
        if rows >= 64:
            # Split into >=2 tiles so the HW-chunk axis can feed both v7x cores.
            r = _round_up(_cdiv(rows, 2), 32)
        else:
            r = rows        # tiny image: one tile, block rows == full array dim
    return r


@jax.jit
def point_seg_loss2(masks, skls, gt_masks):
    """masks: (N, C, H, W) float logits; gt_masks: (N, H, W) integer labels
    (0 = ignore, k > 0 = class k-1).  `skls` is unused, as in the PyTorch module."""
    del skls
    n, c, h, w = masks.shape
    hw = h * w

    # Repack so sublanes are dense.  Free reshapes of contiguous NCHW / NHW
    # whenever HW is a multiple of 128 (the common case for real images).
    pad = (-hw) % 128
    if pad:
        # TODO(synk): H*W not a multiple of 128 pays one extra HBM pass for the
        # pad; an un-repacked (C-on-sublane) fallback kernel would avoid it.
        masks = jnp.pad(masks.reshape(n, c, hw), ((0, 0), (0, 0), (0, pad)))
        gt_masks = jnp.pad(gt_masks.reshape(n, hw), ((0, 0), (0, pad)))
    hw_p = hw + pad
    rows = hw_p // 128

    logits = masks.reshape(n, c, rows, 128)
    gt = gt_masks.reshape(n, rows, 128)    # native (possibly narrow) dtype

    r = _pick_rows_per_tile(rows, c, logits.dtype.itemsize, gt.dtype.itemsize)
    total_tiles = _cdiv(rows, r)
    n_chunks = 2 if total_tiles >= 2 else 1
    tpc = _cdiv(total_tiles, n_chunks)
    grid = (n, n_chunks, tpc)

    # Clamp so the trailing (duplicate) step of an uneven chunk never DMAs a
    # fully out-of-bounds block; the kernel zeroes its contribution via the
    # logical tile index.
    def _tile_idx(chk, t):
        return jnp.minimum(chk * tpc + t, total_tiles - 1)

    vmem_foot = (2 * c * r * 128 * logits.dtype.itemsize
                 + 2 * r * 128 * gt.dtype.itemsize
                 + 2 * r * 128 * 4
                 + 4 * n_chunks * 128 * 4)

    cost = pl.CostEstimate(
        flops=n * hw_p * (6 * c + 10),
        transcendentals=n * hw_p * (c + 1),
        bytes_accessed=(logits.size * logits.dtype.itemsize
                        + gt.size * gt.dtype.itemsize
                        + 2 * n * n_chunks * 128 * 4),
    )

    kernel = functools.partial(_ce_kernel, rows_total=rows, rows_per_tile=r,
                               tiles_per_chunk=tpc)

    sum_out, cnt_out = pl.pallas_call(
        kernel,
        out_shape=(jax.ShapeDtypeStruct((n, n_chunks, 1, 128), jnp.float32),
                   jax.ShapeDtypeStruct((n, n_chunks, 1, 128), jnp.float32)),
        grid_spec=pltpu.PrefetchScalarGridSpec(
            num_scalar_prefetch=0,
            grid=grid,
            in_specs=[
                pl.BlockSpec((1, c, r, 128),
                             lambda i, chk, t: (i, 0, _tile_idx(chk, t), 0)),
                pl.BlockSpec((1, r, 128),
                             lambda i, chk, t: (i, _tile_idx(chk, t), 0)),
            ],
            out_specs=[
                pl.BlockSpec((1, 1, 1, 128), lambda i, chk, t: (i, chk, 0, 0)),
                pl.BlockSpec((1, 1, 1, 128), lambda i, chk, t: (i, chk, 0, 0)),
            ],
            scratch_shapes=[
                pltpu.VMEM((r, 128), jnp.float32),   # per-(row,lane) loss partials
                pltpu.VMEM((r, 128), jnp.float32),   # per-(row,lane) positive count
            ],
        ),
        compiler_params=pltpu.CompilerParams(
            dimension_semantics=("parallel", "parallel", "arbitrary"),
            vmem_limit_bytes=int(max(32 * 1024 * 1024, vmem_foot + (4 << 20))),
        ),
        cost_estimate=cost,
    )(logits, gt)

    total_sum = jnp.sum(sum_out[:, :, 0, 0])
    total_cnt = jnp.sum(cnt_out[:, :, 0, 0])
    # No positive pixels -> inf/nan, matching PyTorch's CrossEntropyLoss over an
    # empty selection.
    return total_sum / total_cnt


def _reference_loss(masks, gt_masks):
    """Pure-JAX reference of the PyTorch forward (for sanity checking)."""
    n, c, h, w = masks.shape
    logits = jnp.transpose(masks, (0, 2, 3, 1)).reshape(-1, c).astype(jnp.float32)
    gt = gt_masks.reshape(-1).astype(jnp.int32)
    valid = (gt > 0).astype(jnp.float32)
    tgt = jnp.maximum(gt - 1, 0)
    logz = jax.scipy.special.logsumexp(logits, axis=-1)
    picked = jnp.take_along_axis(logits, tgt[:, None], axis=-1)[:, 0]
    per = valid * (logz - picked)
    return jnp.sum(per) / jnp.sum(valid)


if __name__ == "__main__":
    key = jax.random.PRNGKey(0)
    k1, k2, k3 = jax.random.split(key, 3)

    N, C, H, W = 2, 4, 16, 16
    masks = jax.random.normal(k1, (N, C, H, W), dtype=jnp.float32)
    skls = jax.random.normal(k2, (N, 2, H, W), dtype=jnp.float32)  # unused by forward
    # labels in {0, 1, ..., C}: 0 = background/ignore, k>0 -> class k-1
    gt_masks = jax.random.randint(k3, (N, H, W), 0, C + 1, dtype=jnp.int32)

    loss = jax.block_until_ready(point_seg_loss2(masks, skls, gt_masks))
    ref = jax.block_until_ready(_reference_loss(masks, gt_masks))
    assert jnp.allclose(loss, ref, rtol=1e-5, atol=1e-5), (loss, ref)

    print("KERNEL_OK")
</pallas_src>

<mosaic_0001>
module attributes {stable_mosaic.version = 11 : i64} {
  func.func @_ce_kernel(%arg0: i32, %arg1: i32, %arg2: i32, %arg3: memref<1x4x2x128xf32, #tpu.memory_space<vmem>>, %arg4: memref<1x2x128xi32, #tpu.memory_space<vmem>>, %arg5: memref<1x1x1x128xf32, #tpu.memory_space<vmem>>, %arg6: memref<1x1x1x128xf32, #tpu.memory_space<vmem>>, %arg7: memref<2x128xf32, #tpu.memory_space<vmem>>, %arg8: memref<2x128xf32, #tpu.memory_space<vmem>>) attributes {dimension_semantics = [#tpu.dimension_semantics<parallel>, #tpu.dimension_semantics<parallel>, #tpu.dimension_semantics<arbitrary>], iteration_bounds = array<i64: 2, 1, 1>, scalar_prefetch = 0 : i64, scratch_operands = 2 : i64, tpu.core_type = #tpu.core_type<tc>, window_params = [{transform_indices = @transform_0, window_bounds = array<i64: 1, 4, 2, 128>}, {transform_indices = @transform_1, window_bounds = array<i64: 1, 2, 128>}, {transform_indices = @transform_2, window_bounds = array<i64: 1, 1, 1, 128>}, {transform_indices = @transform_3, window_bounds = array<i64: 1, 1, 1, 128>}]} {
    %c0_i32 = arith.constant 0 : i32
    %0 = arith.cmpi eq, %arg2, %c0_i32 : i32
    %1 = arith.extui %0 : i1 to i32
    %c0_i32_0 = arith.constant 0 : i32
    %2 = arith.cmpi ne, %1, %c0_i32_0 : i32
    scf.if %2 {
      %cst_24 = arith.constant 0.000000e+00 : f32
      %49 = vector.broadcast %cst_24 : f32 to vector<2x128xf32>
      %c0_25 = arith.constant 0 : index
      %c0_26 = arith.constant 0 : index
      %50 = vector.load %arg7[%c0_25, %c0_26] : memref<2x128xf32, #tpu.memory_space<vmem>>, vector<2x128xf32>
      tpu.vector_store %arg7[%c0_25, %c0_26], %49 {strides = array<i32>} : memref<2x128xf32, #tpu.memory_space<vmem>>, vector<2x128xf32>,
      %cst_27 = arith.constant 0.000000e+00 : f32
      %51 = vector.broadcast %cst_27 : f32 to vector<2x128xf32>
      %c0_28 = arith.constant 0 : index
      %c0_29 = arith.constant 0 : index
      %52 = vector.load %arg8[%c0_28, %c0_29] : memref<2x128xf32, #tpu.memory_space<vmem>>, vector<2x128xf32>
      tpu.vector_store %arg8[%c0_28, %c0_29], %51 {strides = array<i32>} : memref<2x128xf32, #tpu.memory_space<vmem>>, vector<2x128xf32>,
    } else {
    }
    %c0 = arith.constant 0 : index
    %c0_1 = arith.constant 0 : index
    %c0_2 = arith.constant 0 : index
    %c0_3 = arith.constant 0 : index
    %3 = vector.load %arg3[%c0, %c0_1, %c0_2, %c0_3] : memref<1x4x2x128xf32, #tpu.memory_space<vmem>>, vector<1x4x2x128xf32>
    %4 = vector.shape_cast %3 : vector<1x4x2x128xf32> to vector<4x2x128xf32>
    %c0_4 = arith.constant 0 : index
    %c0_5 = arith.constant 0 : index
    %c0_6 = arith.constant 0 : index
    %5 = vector.load %arg4[%c0_4, %c0_5, %c0_6] : memref<1x2x128xi32, #tpu.memory_space<vmem>>, vector<1x2x128xi32>
    %6 = vector.shape_cast %5 : vector<1x2x128xi32> to vector<2x128xi32>
    %c1_i32 = arith.constant 1 : i32
    %7 = arith.muli %arg1, %c1_i32 : i32
    %8 = arith.addi %7, %arg2 : i32
    %9 = tpu.iota {dimensions = array<i32: 0>} : vector<2x128xi32>
    %c2_i32 = arith.constant 2 : i32
    %10 = arith.muli %8, %c2_i32 : i32
    %11 = vector.broadcast %10 : i32 to vector<2x128xi32>
    %12 = arith.addi %11, %9 : vector<2x128xi32>
    %c2_i32_7 = arith.constant 2 : i32
    %13 = vector.broadcast %c2_i32_7 : i32 to vector<2x128xi32>
    %14 = arith.cmpi slt, %12, %13 : vector<2x128xi32>
    %c0_i32_8 = arith.constant 0 : i32
    %15 = vector.broadcast %c0_i32_8 : i32 to vector<2x128xi32>
    %16 = arith.cmpi sgt, %6, %15 : vector<2x128xi32>
    %17 = arith.andi %16, %14 : vector<2x128xi1>
    %c1_i32_9 = arith.constant 1 : i32
    %18 = vector.broadcast %c1_i32_9 : i32 to vector<2x128xi32>
    %19 = arith.subi %6, %18 : vector<2x128xi32>
    %cst = arith.constant dense<0xFF800000> : vector<2x128xf32>
    %20 = vector.multi_reduction <maximumf>, %4, %cst [0] : vector<4x2x128xf32> to vector<2x128xf32>
    %21 = vector.shape_cast %20 : vector<2x128xf32> to vector<1x2x128xf32>
    %22 = vector.broadcast %21 : vector<1x2x128xf32> to vector<4x2x128xf32>
    %23 = arith.subf %4, %22 : vector<4x2x128xf32>
    %24 = math.exp %23 : vector<4x2x128xf32>
    %cst_10 = arith.constant dense<0.000000e+00> : vector<2x128xf32>
    %25 = vector.multi_reduction <add>, %24, %cst_10 [0] : vector<4x2x128xf32> to vector<2x128xf32>
    %26 = math.log %25 : vector<2x128xf32>
    %27 = arith.addf %20, %26 : vector<2x128xf32>
    %28 = tpu.iota {dimensions = array<i32: 0>} : vector<4x2x128xi32>
    %29 = vector.shape_cast %19 : vector<2x128xi32> to vector<1x2x128xi32>
    %30 = vector.broadcast %29 : vector<1x2x128xi32> to vector<4x2x128xi32>
    %31 = arith.cmpi eq, %28, %30 : vector<4x2x128xi32>
    %cst_11 = arith.constant 0.000000e+00 : f32
    %32 = vector.broadcast %cst_11 : f32 to vector<4x2x128xf32>
    %33 = arith.select %31, %4, %32 : vector<4x2x128xi1>, vector<4x2x128xf32>
    %cst_12 = arith.constant dense<0.000000e+00> : vector<2x128xf32>
    %34 = vector.multi_reduction <add>, %33, %cst_12 [0] : vector<4x2x128xf32> to vector<2x128xf32>
    %c0_13 = arith.constant 0 : index
    %c0_14 = arith.constant 0 : index
    %35 = vector.load %arg7[%c0_13, %c0_14] : memref<2x128xf32, #tpu.memory_space<vmem>>, vector<2x128xf32>
    %36 = arith.subf %27, %34 : vector<2x128xf32>
    %cst_15 = arith.constant 0.000000e+00 : f32
    %37 = vector.broadcast %cst_15 : f32 to vector<2x128xf32>
    %38 = arith.select %17, %36, %37 : vector<2x128xi1>, vector<2x128xf32>
    %39 = arith.addf %35, %38 : vector<2x128xf32>
    %c0_16 = arith.constant 0 : index
    %c0_17 = arith.constant 0 : index
    %40 = vector.load %arg7[%c0_16, %c0_17] : memref<2x128xf32, #tpu.memory_space<vmem>>, vector<2x128xf32>
    tpu.vector_store %arg7[%c0_16, %c0_17], %39 {strides = array<i32>} : memref<2x128xf32, #tpu.memory_space<vmem>>, vector<2x128xf32>,
    %c0_18 = arith.constant 0 : index
    %c0_19 = arith.constant 0 : index
    %41 = vector.load %arg8[%c0_18, %c0_19] : memref<2x128xf32, #tpu.memory_space<vmem>>, vector<2x128xf32>
    %42 = arith.extui %17 : vector<2x128xi1> to vector<2x128xi32>
    %43 = arith.sitofp %42 : vector<2x128xi32> to vector<2x128xf32>
    %44 = arith.addf %41, %43 : vector<2x128xf32>
    %c0_20 = arith.constant 0 : index
    %c0_21 = arith.constant 0 : index
    %45 = vector.load %arg8[%c0_20, %c0_21] : memref<2x128xf32, #tpu.memory_space<vmem>>, vector<2x128xf32>
    tpu.vector_store %arg8[%c0_20, %c0_21], %44 {strides = array<i32>} : memref<2x128xf32, #tpu.memory_space<vmem>>, vector<2x128xf32>,
    %c0_i32_22 = arith.constant 0 : i32
    %46 = arith.cmpi eq, %arg2, %c0_i32_22 : i32
    %47 = arith.extui %46 : i1 to i32
    %c0_i32_23 = arith.constant 0 : i32
    %48 = arith.cmpi ne, %47, %c0_i32_23 : i32
    scf.if %48 {
      %cst_24 = arith.constant 0.000000e+00 : f32
      %49 = vector.broadcast %cst_24 : f32 to vector<1x1x1x128xf32>
      %c0_25 = arith.constant 0 : index
      %c0_26 = arith.constant 0 : index
      %50 = vector.load %arg7[%c0_25, %c0_26] : memref<2x128xf32, #tpu.memory_space<vmem>>, vector<2x128xf32>
      %51 = vector.shape_cast %50 : vector<2x128xf32> to vector<1x2x128xf32>
      %cst_27 = arith.constant dense<0.000000e+00> : vector<1xf32>
      %52 = vector.multi_reduction <add>, %51, %cst_27 [1, 2] : vector<1x2x128xf32> to vector<1xf32>
      %53 = vector.shape_cast %52 : vector<1xf32> to vector<1x1x1xf32>
      %54 = vector.extract %53[0, 0, 0] : f32 from vector<1x1x1xf32>
      %55 = vector.broadcast %54 : f32 to vector<1x1x1x128xf32>
      %56 = arith.addf %49, %55 : vector<1x1x1x128xf32>
      %c0_28 = arith.constant 0 : index
      %c0_29 = arith.constant 0 : index
      %c0_30 = arith.constant 0 : index
      %c0_31 = arith.constant 0 : index
      %57 = vector.load %arg5[%c0_28, %c0_29, %c0_30, %c0_31] : memref<1x1x1x128xf32, #tpu.memory_space<vmem>>, vector<1x1x1x128xf32>
      tpu.vector_store %arg5[%c0_28, %c0_29, %c0_30, %c0_31], %56 {strides = array<i32>} : memref<1x1x1x128xf32, #tpu.memory_space<vmem>>, vector<1x1x1x128xf32>,
      %cst_32 = arith.constant 0.000000e+00 : f32
      %58 = vector.broadcast %cst_32 : f32 to vector<1x1x1x128xf32>
      %c0_33 = arith.constant 0 : index
      %c0_34 = arith.constant 0 : index
      %59 = vector.load %arg8[%c0_33, %c0_34] : memref<2x128xf32, #tpu.memory_space<vmem>>, vector<2x128xf32>
      %60 = vector.shape_cast %59 : vector<2x128xf32> to vector<1x2x128xf32>
      %cst_35 = arith.constant dense<0.000000e+00> : vector<1xf32>
      %61 = vector.multi_reduction <add>, %60, %cst_35 [1, 2] : vector<1x2x128xf32> to vector<1xf32>
      %62 = vector.shape_cast %61 : vector<1xf32> to vector<1x1x1xf32>
      %63 = vector.extract %62[0, 0, 0] : f32 from vector<1x1x1xf32>
      %64 = vector.broadcast %63 : f32 to vector<1x1x1x128xf32>
      %65 = arith.addf %58, %64 : vector<1x1x1x128xf32>
      %c0_36 = arith.constant 0 : index
      %c0_37 = arith.constant 0 : index
      %c0_38 = arith.constant 0 : index
      %c0_39 = arith.constant 0 : index
      %66 = vector.load %arg6[%c0_36, %c0_37, %c0_38, %c0_39] : memref<1x1x1x128xf32, #tpu.memory_space<vmem>>, vector<1x1x1x128xf32>
      tpu.vector_store %arg6[%c0_36, %c0_37, %c0_38, %c0_39], %65 {strides = array<i32>} : memref<1x1x1x128xf32, #tpu.memory_space<vmem>>, vector<1x1x1x128xf32>,
    } else {
    }
    return
  }
  func.func @transform_0(%arg0: i32, %arg1: i32, %arg2: i32) -> (i32, i32, i32, i32) {
    %c1_i32 = arith.constant 1 : i32
    %0 = arith.muli %arg1, %c1_i32 : i32
    %1 = arith.addi %0, %arg2 : i32
    %c0_i32 = arith.constant 0 : i32
    %2 = arith.minsi %1, %c0_i32 : i32
    %c0_i32_0 = arith.constant 0 : i32
    %c0_i32_1 = arith.constant 0 : i32
    %c0_i32_2 = arith.constant 0 : i32
    return %arg0, %c0_i32_0, %2, %c0_i32_1 : i32, i32, i32, i32
  }
  func.func @transform_1(%arg0: i32, %arg1: i32, %arg2: i32) -> (i32, i32, i32) {
    %c1_i32 = arith.constant 1 : i32
    %0 = arith.muli %arg1, %c1_i32 : i32
    %1 = arith.addi %0, %arg2 : i32
    %c0_i32 = arith.constant 0 : i32
    %2 = arith.minsi %1, %c0_i32 : i32
    %c0_i32_0 = arith.constant 0 : i32
    %c0_i32_1 = arith.constant 0 : i32
    return %arg0, %2, %c0_i32_0 : i32, i32, i32
  }
  func.func @transform_2(%arg0: i32, %arg1: i32, %arg2: i32) -> (i32, i32, i32, i32) {
    %c0_i32 = arith.constant 0 : i32
    %c0_i32_0 = arith.constant 0 : i32
    %c0_i32_1 = arith.constant 0 : i32
    return %arg0, %arg1, %c0_i32, %c0_i32_0 : i32, i32, i32, i32
  }
  func.func @transform_3(%arg0: i32, %arg1: i32, %arg2: i32) -> (i32, i32, i32, i32) {
    %c0_i32 = arith.constant 0 : i32
    %c0_i32_0 = arith.constant 0 : i32
    %c0_i32_1 = arith.constant 0 : i32
    return %arg0, %arg1, %c0_i32, %c0_i32_0 : i32, i32, i32, i32
  }
}

</mosaic_0001>

<bundles_post_ra>
// kernel: point_seg_loss2.1
= control target key start
LH: loop header
LB: loop body
LE: loop exit
PB: predicated region body
PF: predicated region fallthrough
CT: control target
= control target key end

     0   :  { %s620_s12 = smov 0   ;;  %s622_s13 = smov 0   ;;  %s687_s0 = inlined_call_operand.vmem [shape: f32[2,4,2,128], index: 0, kind: input, shape index: {}]   ;;  %s688_s1 = inlined_call_operand.vmem [shape: s32[2,2,128], index: 1, kind: input, shape index: {}]   ;;  %s689_s2 = inlined_call_operand.vmem [shape: f32[2,1,1,128], index: 2, kind: output, shape index: {0}]   ;;  %s690_s3 = inlined_call_operand.vmem [shape: f32[2,1,1,128], index: 3, kind: output, shape index: {1}]  }
   0x1   :  { %s624_s14 = smov 0  }
   0x2 LB: > { %s33_s15 = sadd.s32 1, %s593_s13  ;;  %p527_p0 = scmp.ge.s32.totalorder %s597_s14, 1  ;;  %s597_s14 = sphi %s624_s14, %s14_s14   ;;  %s593_s13 = sphi %s622_s13, %s694_s13   ;;  %s589_s12 = sphi %s620_s12, %s693_s12  }
   0x3   : > { %p35_p1 = scmp.ge.s32.totalorder %s33_s15, 2  ;;  %p206_p2 = scmp.lt.s32.totalorder %s597_s14, 3 }
   0x5   : > { %s696_s15 = smov (%p35_p1, %s33_s15), 0  ;;  %p207_p3 = pnand %p527_p0, %p206_p2 }
   0x6   : > { %p256_p4 = scmp.lt.s32.totalorder (!%p207_p3), %s589_s12, 1 }
   0x7   : > { %210 = sbr.rel (%p207_p3) target bundleno = 286 (0x11e), region = 28 }
   0xc   : > { %v599_v0 = vmov 0.0   ;;  %v304_v1 = vlaneseq  ;;  %s698_s12 = smov (!%p256_p4, %s589_s12), 1  ;;  %vm313_vm0 = vcmask 1041408  }
   0xd   : > { %296 = vst [vmem:[#allocation2] sm:$0x3] %v599_v0  ;;  %297 = vst [vmem:[#allocation3] sm:$0x3] %v599_v0  ;;  %s535_s16 = sshll.u32 %s698_s12, 3  ;;  %s530_s17 = sshll.u32 %s698_s12, 1 }
   0xe   : > { %s263_s20 = scalar_lea.vmem %s687_s0, %s535_s16  ;;  %v305_v2 = vshrl.u32 %v304_v1, 7  ;;  %s276_s23 = scalar_lea.vmem %s688_s1, %s530_s17 }
   0xf   : > { %v298_v3 = vld [vmem:[%s263_s20] sm:$0x3]  ;;  %v299_v4 = vld [vmem:[%s263_s20 + $0x2] sm:$0x3]  ;;  %v300_v5 = vld [vmem:[%s263_s20 + $0x4] sm:$0x3]  ;;  %s285_s26 = scalar_lea.vmem %s689_s2, %s698_s12  ;;  %s291_s30 = scalar_lea.vmem %s690_s3, %s698_s12 }
  0x10   : > { %v301_v6 = vld [vmem:[%s263_s20 + $0x6] sm:$0x3]  ;;  %v314_v7 = vsel %vm313_vm0, %v298_v3, -inf  ;;  %v315_v8 = vsel %vm313_vm0, %v299_v4, -inf  ;;  %v316_v9 = vsel %vm313_vm0, %v300_v5, -inf  ;;  %vm309_vm1 = vcmp.lt.s32.totalorder %v305_v2, 2 }
  0x11   : > { %v317_v10 = vsel %vm313_vm0, %v301_v6, -inf  ;;  %v302_v11 = vld [vmem:[%s276_s23] sm:$0x3]  ;;  %v318_v12 = vmax.f32 %v314_v7, %v315_v8 }
  0x12   : > { %v319_v13 = vmax.f32 %v316_v9, %v317_v10  ;;  %vm310_vm2 = vcmp.gt.s32.totalorder %v302_v11, 0  ;;  %v531_v31 = vadd.s32 4294967295, %v302_v11 }
  0x13   : > { %vm652_vm3 = vmand %vm310_vm2, %vm309_vm1 }
  0x14   : > { %v320_v14 = vmax.f32 %v318_v12, %v319_v13  ;;  %v363_v15 = vld [vmem:[#allocation3] sm:$0x3]  ;;  %v532_v21 = vsel %vm652_vm3, 1.0, %v599_v0  ;;  %vm343_vm4 = vcmp.eq.s32.totalorder %v531_v31, 0  ;;  %vm344_vm5 = vcmp.eq.s32.totalorder %v531_v31, 1 }
  0x15   : > { %v366_v25 = vadd.f32 %v532_v21, %v363_v15  ;;  %v347_v39 = vsel %vm343_vm4, %v298_v3, 0.0  ;;  %v348_v40 = vsel %vm344_vm5, %v299_v4, 0.0  ;;  %vm345_vm6 = vcmp.eq.s32.totalorder %v531_v31, 2  ;;  %v358_v53 = vld [vmem:[#allocation2] sm:$0x3] }
  0x16   : > { %v321_v17 = vsub.f32 %v298_v3, %v320_v14  ;;  %v322_v18 = vsub.f32 %v299_v4, %v320_v14  ;;  %v323_v19 = vsub.f32 %v300_v5, %v320_v14  ;;  %v324_v20 = vsub.f32 %v301_v6, %v320_v14 }
  0x17   : > { %367 = vst [vmem:[#allocation3] sm:$0x3] %v366_v25  ;;  %v351_v41 = vsel %vm313_vm0, %v347_v39, 0.0  ;;  %v352_v42 = vsel %vm313_vm0, %v348_v40, 0.0  ;;  %v349_v43 = vsel %vm345_vm6, %v300_v5, 0.0  ;;  %vm346_vm7 = vcmp.eq.s32.totalorder %v531_v31, 3 }
  0x18   : > { %v325_v22 = vmul.f32 1.442695, %v321_v17  ;;  %v327_v23 = vmul.f32 1.442695, %v322_v18  ;;  %v329_v24 = vmul.f32 1.442695, %v323_v19  ;;  %v353_v44 = vadd.f32 %v352_v42, %v351_v41 }
  0x19   : > { %v331_v26 = vmul.f32 1.442695, %v324_v20  ;;  %v354_v45 = vsel %vm313_vm0, %v349_v43, 0.0  ;;  %v350_v46 = vsel %vm346_vm7, %v301_v6, 0.0 }
  0x1a   : > { %565 = vpow2.f32 %v325_v22  ;;  %v355_v47 = vadd.f32 %v354_v45, %v353_v44  ;;  %v356_v48 = vsel %vm313_vm0, %v350_v46, 0.0 }
  0x1b   : > { %567 = vpow2.f32 %v327_v23 }
  0x1c   : > { %569 = vpow2.f32 %v329_v24  ;;  %v357_v51 = vadd.f32 %v356_v48, %v355_v47 }
  0x1d   : > { %571 = vpow2.f32 %v331_v26 }
  0x1e   : > { %v385_v58 = vld [vmem:[#allocation3] sm:$0x3] }
  0x1f   : > { %v386_v60 = vsel %vm313_vm0, %v385_v58, 0.0 }
  0x27   : > { %v566_v27 = vpop.eup %565 }
  0x28   : > { %v568_v28 = vpop.eup %567  ;;  %v333_v29 = vsel %vm313_vm0, %v566_v27, 0.0 }
  0x29   : > { %v570_v30 = vpop.eup %569  ;;  %v334_v32 = vsel %vm313_vm0, %v568_v28, 0.0 }
  0x2a   : > { %v572_v33 = vpop.eup %571  ;;  %v335_v34 = vadd.f32 %v334_v32, %v333_v29  ;;  %v336_v35 = vsel %vm313_vm0, %v570_v30, 0.0 }
  0x2b   : > { %v338_v36 = vsel %vm313_vm0, %v572_v33, 0.0 }
  0x2c   : > { %v337_v37 = vadd.f32 %v336_v35, %v335_v34 }
  0x2e   : > { %v339_v38 = vadd.f32 %v338_v36, %v337_v37 }
  0x30   : > { %573 = vlog2.f32 %v339_v38 }
  0x3d   : > { %v574_v49 = vpop.eup %573 }
  0x3e   : > { %v341_v50 = vmul.f32 0.6931472, %v574_v49 }
  0x40   : > { %v342_v52 = vadd.f32 %v341_v50, %v320_v14 }
  0x42   : > { %v359_v54 = vsub.f32 %v342_v52, %v357_v51 }
  0x44   : > { %v360_v55 = vsel %vm652_vm3, %v359_v54, 0.0 }
  0x45   : > { %v361_v56 = vadd.f32 %v360_v55, %v358_v53 }
  0x47   : > { %362 = vst [vmem:[#allocation2] sm:$0x3] %v361_v56 }
  0x4e   : > { %v371_v57 = vld [vmem:[#allocation2] sm:$0x3] }
  0x4f   : > { %v372_v59 = vsel %vm313_vm0, %v371_v57, 0.0 }
  0x50   : > { %373 = vadd.xlane.f32.xlu0 %v372_v59 }
  0x54   : > { %387 = vadd.xlane.f32.xlu0 %v386_v60 }
  0xd9   : > { %v374_v61 = vpop.xlane.xlu0 %373 }
  0xda   : > { %v375_v62 = vrot.slane %v374_v61, 4 }
  0xdc   : > { %v376_v63 = vadd.f32 %v375_v62, %v374_v61 }
  0xdd   : > { %v388_v0 = vpop.xlane.xlu0 %387 }
  0xde   : > { %v377_v1 = vrot.slane %v376_v63, 2  ;;  %v389_v2 = vrot.slane %v388_v0, 4 }
  0xe0   : > { %v390_v3 = vadd.f32 %v389_v2, %v388_v0  ;;  %v378_v4 = vadd.f32 %v377_v1, %v376_v63 }
  0xe2   : > { %v391_v5 = vrot.slane %v390_v3, 2  ;;  %v379_v6 = vrot.slane %v378_v4, 1 }
  0xe4   : > { %v392_v7 = vadd.f32 %v391_v5, %v390_v3  ;;  %v380_v8 = vadd.f32 %v379_v6, %v378_v4 }
  0xe6   : > { %536 = vpush %v380_v8  ;;  %v393_v9 = vrot.slane %v392_v7, 1 }
  0xe8   : > { %v394_v10 = vadd.f32 %v393_v9, %v392_v7 }
  0xea   : > { %538 = vpush %v394_v10 }
 0x117   : > { %s537_s27 = spop %536 }
 0x118   : > { %v382_v11 = vstv %s537_s27 }
 0x119   : > { %384 = vst [vmem:[%s285_s26] sm:$0x1] %v382_v11 }
 0x11b   : > { %s539_s4 = spop %538 }
 0x11c   : > { %v396_v12 = vstv %s539_s4 }
 0x11d   : > { %398 = vst [vmem:[%s291_s30] sm:$0x1] %v396_v12 }
 0x11e PF: > { %s14_s14 = sadd.s32 1, %s597_s14   ;;  %s693_s12 = smov %s593_s13 }
 0x11f   : > { %p11_p5 = scmp.ge.s32.totalorder %s14_s14, 4   ;;  %s694_s13 = smov %s696_s15 }
 0x121   :  { %13 = sbr.rel (!%p11_p5) target bundleno = 2 (0x2), region = 81 }

</bundles_post_ra>
